<compile_context>
chip_gen: v6e
topology: v6e:2x2x1
jax: 0.10.0
libtpu: 0.0.40
codegen_flags: <defaults>
</compile_context>

<pallas_src>
import jax
import jax.numpy as jnp
from jax.experimental import pallas as pl
from jax.experimental.pallas import tpu as pltpu

WIDTH = 16  # register "width" from the module; only used by the power/area tables

# Area / power tables from the PyTorch module (pure Python metadata, not compute)
AREA_DIC = {2: 9.24, 4: 17.47, 8: 34.27, 16: 68.04, 32: 135.07}
D_POWER = {2: 0.000581 + 0.00261, 4: 0.00117 + 0.0052, 8: 0.00219 + 0.0103,
           16: 0.00441 + 0.0207, 32: 0.00855 + 0.0412}
L_POWER = {2: 0.00542, 4: 0.0102, 8: 0.0201, 16: 0.0402, 32: 0.0802}

# Below this many bytes per tensor, a plain XLA copy beats a kernel launch.
_SMALL_COPY_BYTES = 1 << 20  # 1 MiB


# ---------------------------------------------------------------------------
# Input-preserving copy path: direct HBM->HBM DMA(s), no VMEM staging.
# ---------------------------------------------------------------------------
def _pick_num_slices(nbytes, leading_dim):
    """How many contiguous leading-dim slices to copy per tensor."""
    if nbytes >= (64 << 20):
        target = 8      # very large: keep many descriptors in flight (v7x roofline)
    elif nbytes >= (8 << 20):
        target = 4
    elif nbytes >= (1 << 20):
        target = 2
    else:
        target = 1      # small: a single descriptor per tensor is already optimal
    return max(1, min(target, leading_dim))


def _slice_bounds(leading_dim, num_slices):
    """Static, balanced (start, size) pairs covering [0, leading_dim)."""
    base = leading_dim // num_slices
    rem = leading_dim % num_slices
    bounds = []
    start = 0
    for i in range(num_slices):
        size = base + (1 if i < rem else 0)
        if size > 0:
            bounds.append((start, size))
            start += size
    return tuple(bounds)


def _make_dma_copy_kernel(bounds):
    """Kernel: q_out <- d_state, d_out <- x, as HBM->HBM DMAs per slice."""

    def kernel(d_state_hbm, x_hbm, q_out_hbm, d_out_hbm, sem):
        copies = []
        for s, (start, size) in enumerate(bounds):
            sl = pl.ds(start, size)
            copies.append(pltpu.make_async_copy(
                d_state_hbm.at[sl], q_out_hbm.at[sl], sem.at[0, s]))
            copies.append(pltpu.make_async_copy(
                x_hbm.at[sl], d_out_hbm.at[sl], sem.at[1, s]))
        # Start everything before waiting so the DMA engines pipeline all
        # descriptors concurrently (start-all-then-wait).
        for c in copies:
            c.start()
        for c in copies:
            c.wait()

    return kernel


def _register_dma_copy_call(d_state, x):
    leading_dim = x.shape[0] if x.ndim >= 1 else 1
    num_slices = _pick_num_slices(x.nbytes, leading_dim)
    bounds = _slice_bounds(leading_dim, num_slices) if x.ndim >= 1 else ((0, 1),)
    if x.ndim == 0:
        # 0-d tensors: fall back to a single whole-ref copy (no slicing).
        def kernel(d_state_hbm, x_hbm, q_out_hbm, d_out_hbm, sem):
            q_copy = pltpu.make_async_copy(d_state_hbm, q_out_hbm, sem.at[0, 0])
            d_copy = pltpu.make_async_copy(x_hbm, d_out_hbm, sem.at[1, 0])
            q_copy.start()
            d_copy.start()
            q_copy.wait()
            d_copy.wait()
        n_sem = 1
    else:
        kernel = _make_dma_copy_kernel(bounds)
        n_sem = len(bounds)

    any_spec = pl.BlockSpec(memory_space=pl.ANY)
    return pl.pallas_call(
        kernel,
        in_specs=[any_spec, any_spec],
        out_specs=[any_spec, any_spec],
        out_shape=(
            jax.ShapeDtypeStruct(x.shape, x.dtype),
            jax.ShapeDtypeStruct(x.shape, x.dtype),
        ),
        scratch_shapes=[pltpu.SemaphoreType.DMA((2, n_sem))],
        # Pure memcpy: read + write of both tensors.  Lets XLA's scheduler
        # overlap this opaque custom call with surrounding compute.
        cost_estimate=pl.CostEstimate(
            flops=0,
            transcendentals=0,
            bytes_accessed=4 * int(x.nbytes),
        ),
    )(d_state, x)


# ---------------------------------------------------------------------------
# Public functional API
# ---------------------------------------------------------------------------
def register_forward(d_state, x, *, preserve_inputs=False, force_pallas_copy=False):
    """Functional register update: returns (q_new, d_new) = (d_state, x).

    Args:
      d_state: currently latched value (same shape/dtype as x).
      x: new input.
      preserve_inputs: if False (default), the outputs ARE the inputs (pure
        re-binding, zero cost -- exactly the PyTorch reference semantics).
        XLA handles any aliasing/donation at the jit boundary; note that if
        the caller later donates these buffers, the originals are invalidated.
        If True, fresh output buffers are produced: small tensors use a plain
        XLA copy, large tensors use direct HBM->HBM DMA copies via Pallas.
      force_pallas_copy: force the Pallas DMA path even for small tensors
        (used for testing the kernel).
    Returns:
      (q_new, d_new)
    """
    assert d_state.shape == x.shape and d_state.dtype == x.dtype
    if not preserve_inputs:
        # Biggest win: no kernel at all.  Two identities -> return the tuple.
        return d_state, x
    if not force_pallas_copy and x.nbytes < _SMALL_COPY_BYTES:
        # KB-scale copy: launch overhead dwarfs the copy; let XLA do it.
        return jnp.copy(d_state), jnp.copy(x)
    return _register_dma_copy_call(d_state, x)


# Metadata helpers (pure scalars; no Pallas equivalent needed)
def get_area(width=WIDTH):
    return AREA_DIC[width] / 1000000.0


def get_dpower(width=WIDTH):
    return D_POWER[width]


def get_lpower(width=WIDTH):
    return L_POWER[width] / 1000.0
# TODO(synk): get_total_power in the reference adds a bound method (bug in the
# original PyTorch code); not reproduced here.


if __name__ == "__main__":
    key = jax.random.PRNGKey(0)
    k1, k2 = jax.random.split(key)
    # small NCHW-shaped input, consistent with a tensor being latched
    x = jax.random.normal(k1, (2, 4, 16, 16), dtype=jnp.float32)
    d_state = jax.random.normal(k2, (2, 4, 16, 16), dtype=jnp.float32)

    expected_q = jnp.array(d_state, copy=True)
    expected_d = jnp.array(x, copy=True)
    jax.block_until_ready((expected_q, expected_d))

    # 1) Pallas HBM->HBM DMA copy path (forced, so the kernel is exercised
    #    even at this small size).  Inputs are preserved.
    q_copy, d_copy = register_forward(
        d_state, x, preserve_inputs=True, force_pallas_copy=True)
    jax.block_until_ready((q_copy, d_copy))
    assert jnp.array_equal(q_copy, expected_q)
    assert jnp.array_equal(d_copy, expected_d)
    assert jnp.array_equal(d_state, expected_q)  # inputs untouched
    assert jnp.array_equal(x, expected_d)

    # 2) Input-preserving small-tensor path (plain XLA copy, no kernel).
    q_small, d_small = register_forward(d_state, x, preserve_inputs=True)
    jax.block_until_ready((q_small, d_small))
    assert jnp.array_equal(q_small, expected_q)
    assert jnp.array_equal(d_small, expected_d)

    # 3) Default path: pure re-binding, zero cost (matches the PyTorch
    #    reference, which never copies).
    q_new, d_new = register_forward(d_state, x)
    jax.block_until_ready((q_new, d_new))
    assert jnp.array_equal(q_new, expected_q)
    assert jnp.array_equal(d_new, expected_d)

    print("KERNEL_OK")
</pallas_src>

<mosaic_0001>
module attributes {stable_mosaic.version = 11 : i64} {
  func.func @kernel(%arg0: memref<2x4x16x16xf32, #tpu.memory_space<any>>, %arg1: memref<2x4x16x16xf32, #tpu.memory_space<any>>, %arg2: memref<2x4x16x16xf32, #tpu.memory_space<any>>, %arg3: memref<2x4x16x16xf32, #tpu.memory_space<any>>, %arg4: memref<2x1x!tpu.dma_semaphore, #tpu.memory_space<semaphore_mem>>) attributes {dimension_semantics = [], scalar_prefetch = 0 : i64, scratch_operands = 1 : i64, tpu.core_type = #tpu.core_type<tc>} {
    %c0_i32 = arith.constant 0 : i32
    %c0_i32_0 = arith.constant 0 : i32
    %c0_i32_1 = arith.constant 0 : i32
    %c0_i32_2 = arith.constant 0 : i32
    %c0_i32_3 = arith.constant 0 : i32
    %c0_i32_4 = arith.constant 0 : i32
    %0 = tpu.memref_slice %arg0[%c0_i32_1, %c0_i32_2, %c0_i32_3, %c0_i32_4] : memref<2x4x16x16xf32, #tpu.memory_space<any>> -> memref<2x4x16x16xf32, #tpu.memory_space<any>>
    %c0_i32_5 = arith.constant 0 : i32
    %c0_i32_6 = arith.constant 0 : i32
    %c0_i32_7 = arith.constant 0 : i32
    %c0_i32_8 = arith.constant 0 : i32
    %1 = tpu.memref_slice %arg2[%c0_i32_5, %c0_i32_6, %c0_i32_7, %c0_i32_8] : memref<2x4x16x16xf32, #tpu.memory_space<any>> -> memref<2x4x16x16xf32, #tpu.memory_space<any>>
    %2 = tpu.memref_slice %arg4[%c0_i32, %c0_i32_0] : memref<2x1x!tpu.dma_semaphore, #tpu.memory_space<semaphore_mem>> -> memref<1x1x!tpu.dma_semaphore, #tpu.memory_space<semaphore_mem>>
    %3 = tpu.memref_squeeze %2 : memref<1x1x!tpu.dma_semaphore, #tpu.memory_space<semaphore_mem>> -> memref<!tpu.dma_semaphore, #tpu.memory_space<semaphore_mem>>
    tpu.enqueue_dma source(%0 : memref<2x4x16x16xf32, #tpu.memory_space<any>>) target(%1 : memref<2x4x16x16xf32, #tpu.memory_space<any>>) target_semaphore(%3 : memref<!tpu.dma_semaphore, #tpu.memory_space<semaphore_mem>>)
    %c1_i32 = arith.constant 1 : i32
    %c0_i32_9 = arith.constant 0 : i32
    %c0_i32_10 = arith.constant 0 : i32
    %c0_i32_11 = arith.constant 0 : i32
    %c0_i32_12 = arith.constant 0 : i32
    %c0_i32_13 = arith.constant 0 : i32
    %4 = tpu.memref_slice %arg1[%c0_i32_10, %c0_i32_11, %c0_i32_12, %c0_i32_13] : memref<2x4x16x16xf32, #tpu.memory_space<any>> -> memref<2x4x16x16xf32, #tpu.memory_space<any>>
    %c0_i32_14 = arith.constant 0 : i32
    %c0_i32_15 = arith.constant 0 : i32
    %c0_i32_16 = arith.constant 0 : i32
    %c0_i32_17 = arith.constant 0 : i32
    %5 = tpu.memref_slice %arg3[%c0_i32_14, %c0_i32_15, %c0_i32_16, %c0_i32_17] : memref<2x4x16x16xf32, #tpu.memory_space<any>> -> memref<2x4x16x16xf32, #tpu.memory_space<any>>
    %6 = tpu.memref_slice %arg4[%c1_i32, %c0_i32_9] : memref<2x1x!tpu.dma_semaphore, #tpu.memory_space<semaphore_mem>> -> memref<1x1x!tpu.dma_semaphore, #tpu.memory_space<semaphore_mem>>
    %7 = tpu.memref_squeeze %6 : memref<1x1x!tpu.dma_semaphore, #tpu.memory_space<semaphore_mem>> -> memref<!tpu.dma_semaphore, #tpu.memory_space<semaphore_mem>>
    tpu.enqueue_dma source(%4 : memref<2x4x16x16xf32, #tpu.memory_space<any>>) target(%5 : memref<2x4x16x16xf32, #tpu.memory_space<any>>) target_semaphore(%7 : memref<!tpu.dma_semaphore, #tpu.memory_space<semaphore_mem>>)
    %c0_i32_18 = arith.constant 0 : i32
    %c0_i32_19 = arith.constant 0 : i32
    %c0_i32_20 = arith.constant 0 : i32
    %c0_i32_21 = arith.constant 0 : i32
    %c0_i32_22 = arith.constant 0 : i32
    %c0_i32_23 = arith.constant 0 : i32
    %8 = tpu.memref_slice %arg0[%c0_i32_20, %c0_i32_21, %c0_i32_22, %c0_i32_23] : memref<2x4x16x16xf32, #tpu.memory_space<any>> -> memref<2x4x16x16xf32, #tpu.memory_space<any>>
    %c0_i32_24 = arith.constant 0 : i32
    %c0_i32_25 = arith.constant 0 : i32
    %c0_i32_26 = arith.constant 0 : i32
    %c0_i32_27 = arith.constant 0 : i32
    %9 = tpu.memref_slice %arg2[%c0_i32_24, %c0_i32_25, %c0_i32_26, %c0_i32_27] : memref<2x4x16x16xf32, #tpu.memory_space<any>> -> memref<2x4x16x16xf32, #tpu.memory_space<any>>
    %10 = tpu.memref_slice %arg4[%c0_i32_18, %c0_i32_19] : memref<2x1x!tpu.dma_semaphore, #tpu.memory_space<semaphore_mem>> -> memref<1x1x!tpu.dma_semaphore, #tpu.memory_space<semaphore_mem>>
    %11 = tpu.memref_squeeze %10 : memref<1x1x!tpu.dma_semaphore, #tpu.memory_space<semaphore_mem>> -> memref<!tpu.dma_semaphore, #tpu.memory_space<semaphore_mem>>
    tpu.wait_dma2 semaphore(%11 : memref<!tpu.dma_semaphore, #tpu.memory_space<semaphore_mem>>) src(%8 : memref<2x4x16x16xf32, #tpu.memory_space<any>>) dst(%9 : memref<2x4x16x16xf32, #tpu.memory_space<any>>)
    %c1_i32_28 = arith.constant 1 : i32
    %c0_i32_29 = arith.constant 0 : i32
    %c0_i32_30 = arith.constant 0 : i32
    %c0_i32_31 = arith.constant 0 : i32
    %c0_i32_32 = arith.constant 0 : i32
    %c0_i32_33 = arith.constant 0 : i32
    %12 = tpu.memref_slice %arg1[%c0_i32_30, %c0_i32_31, %c0_i32_32, %c0_i32_33] : memref<2x4x16x16xf32, #tpu.memory_space<any>> -> memref<2x4x16x16xf32, #tpu.memory_space<any>>
    %c0_i32_34 = arith.constant 0 : i32
    %c0_i32_35 = arith.constant 0 : i32
    %c0_i32_36 = arith.constant 0 : i32
    %c0_i32_37 = arith.constant 0 : i32
    %13 = tpu.memref_slice %arg3[%c0_i32_34, %c0_i32_35, %c0_i32_36, %c0_i32_37] : memref<2x4x16x16xf32, #tpu.memory_space<any>> -> memref<2x4x16x16xf32, #tpu.memory_space<any>>
    %14 = tpu.memref_slice %arg4[%c1_i32_28, %c0_i32_29] : memref<2x1x!tpu.dma_semaphore, #tpu.memory_space<semaphore_mem>> -> memref<1x1x!tpu.dma_semaphore, #tpu.memory_space<semaphore_mem>>
    %15 = tpu.memref_squeeze %14 : memref<1x1x!tpu.dma_semaphore, #tpu.memory_space<semaphore_mem>> -> memref<!tpu.dma_semaphore, #tpu.memory_space<semaphore_mem>>
    tpu.wait_dma2 semaphore(%15 : memref<!tpu.dma_semaphore, #tpu.memory_space<semaphore_mem>>) src(%12 : memref<2x4x16x16xf32, #tpu.memory_space<any>>) dst(%13 : memref<2x4x16x16xf32, #tpu.memory_space<any>>)
    return
  }
}

</mosaic_0001>

<bundles_post_ra>
// kernel: tpu_custom_call.1
= control target key start
LH: loop header
LB: loop body
LE: loop exit
PB: predicated region body
PF: predicated region fallthrough
CT: control target
= control target key end

     0   :  { %s54_s12 = smov [#allocation2]   ;;  %s55_s13 = smov 131072   ;;  %s90_s0 = inlined_call_operand.hbm [shape: f32[2,4,16,16], index: 0, kind: input, shape index: {}]   ;;  %s91_s2 = inlined_call_operand.hbm [shape: f32[2,4,16,16], index: 2, kind: output, shape index: {0}]   ;;  %s92_s1 = inlined_call_operand.hbm [shape: f32[2,4,16,16], index: 1, kind: input, shape index: {}]   ;;  %s93_s3 = inlined_call_operand.hbm [shape: f32[2,4,16,16], index: 3, kind: output, shape index: {1}]  }
   0x1   :  { %s56_s14 = smov 0   ;;  %s57_s19 = smov [#allocation2 + $0x1]  }
   0x2   :  { %15 = dma.general %s90_s0, 2048, %s91_s2, %s54_s12, %s55_s13, [#allocation4], %s56_s14, 0  }
   0x3   :  { %23 = dma.general %s92_s1, 2048, %s93_s3, %s57_s19, %s55_s13, [#allocation6], %s56_s14, 0  }
   0x4   :  { %50 = dma.done.wait [#allocation2], 2048 }
   0x5   :  { %51 = vsyncadd [#allocation2], 4294965248 }
   0x6   :  { %52 = dma.done.wait [#allocation2 + $0x1], 2048 }
   0x7   :  { %53 = vsyncadd [#allocation2 + $0x1], 4294965248 }
   0x8   :  { %31 = vsyncmov [#allocation2] }
   0xb   :  { %s32_s24 = vpop.sfrf %31 }
   0xc   :  { %p44_p0 = scmp.ne.s32.totalorder %s32_s24, 0 }
   0xe   :  { %36 = shalt.err (%p44_p0)  }
   0xf   :  { %38 = vsyncmov [#allocation2 + $0x1] }
  0x12   :  { %s39_s25 = vpop.sfrf %38 }
  0x13   :  { %p45_p1 = scmp.ne.s32.totalorder %s39_s25, 0 }
  0x15   :  { %43 = shalt.err (%p45_p1)  }

</bundles_post_ra>
